<compile_context>
chip_gen: v7x
topology: tpu7x:2x2x1
jax: 0.10.0
libtpu: 0.0.40
codegen_flags: <defaults>
</compile_context>

<pallas_src>
import functools

import numpy as np
import jax
import jax.numpy as jnp
from jax import lax
from jax.experimental import pallas as pl
from jax.experimental.pallas import tpu as pltpu

LANE_WIDTH = 128      # lane-dense output width (vreg lane count)
NEG_LARGE = -1e30     # finite "minus infinity" for masked log_softmax


# ----------------------------- Pallas kernel ------------------------------ #

def _measure_logsoftmax_kernel(state_ref, zsign_ref, out_ref, *, n_output):
    """|amp|^2 -> <Z_p> -> log_softmax, lane-dense (1, W) output."""
    W = zsign_ref.shape[1]                                     # padded width

    state = state_ref[...]                                     # (1, D) f32
    probs = state * state                                      # VPU (real state)

    # <Z_p> = sum_i |psi_i|^2 * sign_p(i): single (1,D)@(D,W) MXU matmul,
    # lane-dense on the output side.
    ev = jnp.dot(probs, zsign_ref[...],
                 preferred_element_type=jnp.float32)           # (1, W)

    # log_softmax over the first n_output lanes; padded lanes are masked with a
    # large finite negative and zeroed at the end so the (1, W) store is a
    # full-width, unmasked vst.
    col = lax.broadcasted_iota(jnp.int32, (1, W), 1)
    valid = col < n_output
    ev_m = jnp.where(valid, ev, NEG_LARGE)
    m = jnp.max(ev_m, axis=1, keepdims=True)
    expv = jnp.where(valid, jnp.exp(ev_m - m), 0.0)
    lse = jnp.log(jnp.sum(expv, axis=1, keepdims=True)) + m
    out_ref[...] = jnp.where(valid, ev_m - lse, 0.0)


def quantum_forward_pallas(state_row, zsign_pad, n_output):
    """state_row: (1, D) f32 final state; zsign_pad: (D, LANE_WIDTH) f32."""
    W = zsign_pad.shape[1]
    out = pl.pallas_call(
        functools.partial(_measure_logsoftmax_kernel, n_output=n_output),
        out_shape=jax.ShapeDtypeStruct((1, W), jnp.float32),
        # Grid-free call, whole-array VMEM residency: no pipeline prologue /
        # epilogue, no per-input double-buffering for a ~9 KiB footprint.
        in_specs=[
            pl.BlockSpec(memory_space=pltpu.MemorySpace.VMEM),
            pl.BlockSpec(memory_space=pltpu.MemorySpace.VMEM),
        ],
        out_specs=pl.BlockSpec(memory_space=pltpu.MemorySpace.VMEM),
    )(state_row, zsign_pad)
    return out[:, :n_output]


# --------------------------- circuit construction -------------------------- #
# Host-side glue (float64): exact state-vector evolution, cast to f32.

def _kron_list(mats):
    out = mats[0]
    for m in mats[1:]:
        out = np.kron(out, m)
    return out


def _single_qubit_full(u, wire, n_qubits):
    mats = [np.eye(2, dtype=np.float64) for _ in range(n_qubits)]
    mats[wire] = u
    return _kron_list(mats)


def _cnot_full(control, target, n_qubits):
    D = 2 ** n_qubits
    M = np.zeros((D, D), dtype=np.float64)
    for i in range(D):
        bits = [(i >> (n_qubits - 1 - w)) & 1 for w in range(n_qubits)]
        if bits[control] == 1:
            bits[target] ^= 1
        j = sum(b << (n_qubits - 1 - w) for w, b in enumerate(bits))
        M[j, i] = 1.0
    return M


def _hadamard():
    return (1.0 / np.sqrt(2.0)) * np.array([[1.0, 1.0], [1.0, -1.0]],
                                           dtype=np.float64)


def _ry(theta):
    c, s = np.cos(theta / 2.0), np.sin(theta / 2.0)
    return np.array([[c, -s], [s, c]], dtype=np.float64)


def _circuit_gate_list(q_params, q_depth, n_qubits):
    """Full per-gate list (float64), in application order."""
    q_weights = np.asarray(q_params, dtype=np.float64).reshape(q_depth, n_qubits)
    gates = []
    for w in range(n_qubits):
        gates.append(_single_qubit_full(_hadamard(), w, n_qubits))
    for layer in range(q_depth):
        for node in range(n_qubits):
            gates.append(_single_qubit_full(_ry(q_weights[layer, node]),
                                            node, n_qubits))
            gates.append(_cnot_full(node, (node + 1) % n_qubits, n_qubits))
    return gates


def _zsign(n_qubits, n_output):
    D = 2 ** n_qubits
    z = np.zeros((D, n_output), dtype=np.float64)
    for i in range(D):
        for p in range(n_output):
            bit = (i >> (n_qubits - 1 - p)) & 1
            z[i, p] = 1.0 - 2.0 * bit
    return z


def build_final_state_and_zsign(q_params, q_depth, n_qubits, n_output,
                                lane_width=LANE_WIDTH):
    """Contract the full circuit (incl. |0...0>) on the host in float64.

    Returns:
      state_row: (1, D) f32 -- final state vector (real for H/RY/CNOT).
      zsign_pad: (D, lane_width) f32 -- PauliZ signs, zero-padded lane-dense.
    """
    assert n_output <= lane_width
    D = 2 ** n_qubits

    state = np.zeros((D,), dtype=np.float64)
    state[0] = 1.0
    for g in _circuit_gate_list(q_params, q_depth, n_qubits):
        state = g @ state

    state_row = state[None, :].astype(np.float32)              # (1, D)

    zsign_pad = np.zeros((D, lane_width), dtype=np.float32)
    zsign_pad[:, :n_output] = _zsign(n_qubits, n_output).astype(np.float32)

    return jnp.asarray(state_row), jnp.asarray(zsign_pad)


# ------------------------------ reference ---------------------------------- #

def reference_forward_numpy(q_params, q_depth, n_qubits, n_output):
    """Ground-truth spec: float64, per-gate evolution + expvals + log_softmax."""
    D = 2 ** n_qubits
    state = np.zeros((D,), dtype=np.float64)
    state[0] = 1.0
    for g in _circuit_gate_list(q_params, q_depth, n_qubits):
        state = g @ state
    probs = state * state
    ev = (probs @ _zsign(n_qubits, n_output))[None, :]          # (1, n_output)
    m = ev.max(axis=1, keepdims=True)
    lse = np.log(np.exp(ev - m).sum(axis=1, keepdims=True)) + m
    return ev - lse


# ----------------------------------- main ---------------------------------- #

if __name__ == "__main__":
    q_depth, n_qubits, n_output = 3, 4, 4
    D = 2 ** n_qubits

    # Deterministic parameter init (stand-in for nn.Parameter(torch.randn(...))).
    key = jax.random.PRNGKey(0)
    q_params = jax.random.normal(key, (q_depth * n_qubits,), dtype=jnp.float32)
    q_params_np = np.asarray(q_params, dtype=np.float64)

    state_row, zsign_pad = build_final_state_and_zsign(
        q_params_np, q_depth, n_qubits, n_output)

    out = quantum_forward_pallas(state_row, zsign_pad, n_output)
    out = jax.block_until_ready(out)

    ref = reference_forward_numpy(q_params_np, q_depth, n_qubits, n_output)
    np.testing.assert_allclose(np.asarray(out), ref, rtol=1e-5, atol=1e-5)
    assert out.shape == (1, n_output) and out.dtype == jnp.float32

    print("KERNEL_OK")
</pallas_src>

<mosaic_0001>
module attributes {stable_mosaic.version = 11 : i64} {
  func.func @_measure_logsoftmax_kernel(%arg0: memref<1x16xf32, #tpu.memory_space<vmem>>, %arg1: memref<16x128xf32, #tpu.memory_space<vmem>>, %arg2: memref<1x128xf32, #tpu.memory_space<vmem>>) attributes {dimension_semantics = [], scalar_prefetch = 0 : i64, scratch_operands = 0 : i64, tpu.core_type = #tpu.core_type<tc>} {
    %c0 = arith.constant 0 : index
    %c0_0 = arith.constant 0 : index
    %0 = vector.load %arg0[%c0, %c0_0] : memref<1x16xf32, #tpu.memory_space<vmem>>, vector<1x16xf32>
    %1 = arith.mulf %0, %0 : vector<1x16xf32>
    %c0_1 = arith.constant 0 : index
    %c0_2 = arith.constant 0 : index
    %2 = vector.load %arg1[%c0_1, %c0_2] : memref<16x128xf32, #tpu.memory_space<vmem>>, vector<16x128xf32>
    %cst = arith.constant dense<0.000000e+00> : vector<1x128xf32>
    %3 = tpu.matmul %1, %2, %cst {dimension_numbers = #tpu.dot_dimension_numbers<[1], [0], [0], [1], [0, 0, 1, 1], [], []>} : vector<1x16xf32>, vector<16x128xf32>, vector<1x128xf32> -> vector<1x128xf32>
    %4 = tpu.iota {dimensions = array<i32: 1>} : vector<1x128xi32>
    %c4_i32 = arith.constant 4 : i32
    %5 = vector.broadcast %c4_i32 : i32 to vector<1x128xi32>
    %6 = arith.cmpi slt, %4, %5 : vector<1x128xi32>
    %cst_3 = arith.constant -1.000000e+30 : f32
    %7 = vector.broadcast %cst_3 : f32 to vector<1x128xf32>
    %8 = arith.select %6, %3, %7 : vector<1x128xi1>, vector<1x128xf32>
    %cst_4 = arith.constant dense<0xFF800000> : vector<1xf32>
    %9 = vector.multi_reduction <maximumf>, %8, %cst_4 [1] : vector<1x128xf32> to vector<1xf32>
    %10 = vector.shape_cast %9 : vector<1xf32> to vector<1x1xf32>
    %11 = vector.broadcast %10 : vector<1x1xf32> to vector<1x128xf32>
    %12 = arith.subf %8, %11 : vector<1x128xf32>
    %13 = math.exp %12 : vector<1x128xf32>
    %cst_5 = arith.constant 0.000000e+00 : f32
    %14 = vector.broadcast %cst_5 : f32 to vector<1x128xf32>
    %15 = arith.select %6, %13, %14 : vector<1x128xi1>, vector<1x128xf32>
    %cst_6 = arith.constant dense<0.000000e+00> : vector<1xf32>
    %16 = vector.multi_reduction <add>, %15, %cst_6 [1] : vector<1x128xf32> to vector<1xf32>
    %17 = vector.shape_cast %16 : vector<1xf32> to vector<1x1xf32>
    %18 = math.log %17 : vector<1x1xf32>
    %19 = arith.addf %18, %10 : vector<1x1xf32>
    %20 = vector.broadcast %19 : vector<1x1xf32> to vector<1x128xf32>
    %21 = arith.subf %8, %20 : vector<1x128xf32>
    %cst_7 = arith.constant 0.000000e+00 : f32
    %22 = vector.broadcast %cst_7 : f32 to vector<1x128xf32>
    %23 = arith.select %6, %21, %22 : vector<1x128xi1>, vector<1x128xf32>
    %c0_8 = arith.constant 0 : index
    %c0_9 = arith.constant 0 : index
    %24 = vector.load %arg2[%c0_8, %c0_9] : memref<1x128xf32, #tpu.memory_space<vmem>>, vector<1x128xf32>
    tpu.vector_store %arg2[%c0_8, %c0_9], %23 {strides = array<i32>} : memref<1x128xf32, #tpu.memory_space<vmem>>, vector<1x128xf32>,
    return
  }
}

</mosaic_0001>

<bundles_post_ra>
// kernel: tpu_custom_call.1
= control target key start
LH: loop header
LB: loop body
LE: loop exit
PB: predicated region body
PF: predicated region fallthrough
CT: control target
= control target key end

     0   :  { %7 = vsyncpa [#allocation3], 0  ;;  %s320_s0 = inlined_call_operand.hbm [shape: f32[1,16], index: 0, kind: input, shape index: {}]   ;;  %s321_s1 = inlined_call_operand.hbm [shape: f32[16,128], index: 1, kind: input, shape index: {}]   ;;  %s322_s2 = inlined_call_operand.hbm [shape: f32[1,128], index: 2, kind: output, shape index: {}]  }
   0x1   :  { %8 = vsyncpa [#allocation6], 0 }
   0x2   :  { %9 = vsyncpa [#allocation4], 0  ;;  %s251_s9 = smov [#allocation2]   ;;  %s252_s11 = smov [#allocation5]  }
   0x3   :  { %s16_s10 = sshll.u32 %s251_s9, 4  ;;  %s25_s12 = sshll.u32 %s252_s11, 4  ;;  %s17_s10 = int_to_ptr.vmem [resolvable:$true] %s16_s10  ;;  %s274_s12 = int_to_ptr.vmem [resolvable:$true] %s25_s12 }
   0x4   :  { %s179_s15 = scalar_lea.hbm %s320_s0, 16 }
   0x5   :  { %p180_p0 = scmp.ne.s32.totalorder %s320_s0, %s179_s15  ;;  %p183_p1 = scmp.lt.u32.totalorder %s179_s15, %s320_s0 }
   0x7   :  { %p185_p2 = pnand %p183_p1, %p180_p0 }
   0x9   :  { %188 = shalt.err (!%p185_p2)
}
   0xa   :  { %s189_s20 = scalar_lea.vmem %s17_s10, 16  ;;  %s193_s21 = scalar_lea.vmem %s17_s10, 32 }
   0xb   :  { %p190_p3 = scmp.ne.s32.totalorder %s17_s10, %s189_s20  ;;  %p194_p4 = scmp.lt.s32.totalorder %s17_s10, %s17_s10 }
   0xc   :  { %p195_p5 = scmp.lt.s32.totalorder %s193_s21, %s189_s20 }
   0xe   :  { %p196_p6 = por %p195_p5, %p194_p4 }
  0x10   :  { %p197_p7 = pnand %p196_p6, %p190_p3 }
  0x12   :  { %200 = shalt.err (!%p197_p7)
}
  0x13   :  { %19 = dma.hbm_to_vmem [thread:$0]  %s320_s0, 16, %s17_s10, [#allocation3]  }
  0x14   :  { %s201_s26 = scalar_lea.hbm %s321_s1, 256 }
  0x15   :  { %p202_p8 = scmp.ne.s32.totalorder %s321_s1, %s201_s26  ;;  %p205_p9 = scmp.lt.u32.totalorder %s201_s26, %s321_s1 }
  0x17   :  { %p207_p10 = pnand %p205_p9, %p202_p8 }
  0x19   :  { %210 = shalt.err (!%p207_p10)
}
  0x1a   :  { %s211_s3 = scalar_lea.vmem %s274_s12, 256  ;;  %p216_p12 = scmp.lt.s32.totalorder %s274_s12, %s274_s12 }
  0x1b   :  { %p212_p11 = scmp.ne.s32.totalorder %s274_s12, %s211_s3  ;;  %p217_p13 = scmp.lt.s32.totalorder %s211_s3, %s211_s3 }
  0x1d   :  { %p218_p0 = por %p217_p13, %p216_p12 }
  0x1f   :  { %p219_p1 = pnand %p218_p0, %p212_p11 }
  0x21   :  { %222 = shalt.err (!%p219_p1)
}
  0x22   :  { %s253_s0 = smov 128   ;;  %s254_s4 = smov 8  }
  0x23   :  { %31 = dma.hbm_to_vmem [thread:$0]  %s321_s1, 256, %s274_s12, [#allocation6], %s253_s0, %s253_s0, %s254_s4  }
  0x24   :  { %245 = dma.done.wait [#allocation3], 16  }
  0x25   :  { %246 = vsyncadd [#allocation3], 4294967280 }
  0x26   :  { %247 = dma.done.wait [#allocation6], 256  }
  0x27   :  { %248 = vsyncadd [#allocation6], 4294967040  ;;  %v255_v0 = vmov 0.0|0.0   ;;  %vm256_vm0 = vmmov 0   ;;  %v257_v1 = vmov 0.0   ;;  %v40_v2 = vld [vmem:[#allocation5] sm:$0xff]  ;;  %v116_v7 = vlaneseq }
  0x28   :  { %164 = vmatprep.subr.bf16.mxu0 %v255_v0  ;;  %161 = vmatprep.mubr.msk.f32.mxu0 %vm256_vm0, %v257_v1  ;;  %v41_v3 = vld [vmem:[#allocation5 + $0x8] sm:$0xff]  ;;  %v38_v4 = vld [vmem:[#allocation2] sm:$0x1]  ;;  %vm42_vm1 = vcmask 130048   ;;  %vm120_vm3 = vcmask 1040384   ;;  %s258_s1 = smov [#allocation7]  }
  0x29   :  { %v165_v5 = vpack.c.bf16 %v41_v3, %v40_v2  ;;  %v39_v6 = vmul.f32 %v38_v4, %v38_v4  ;;  %v117_v8 = vand.u32 127, %v116_v7  ;;  %s143_s7 = sshll.u32 %s258_s1, 4  ;;  %s144_s7 = int_to_ptr.vmem [resolvable:$true] %s143_s7 }
  0x2a   :  { %s223_s8 = scalar_lea.vmem %s144_s7, 16  ;;  %s227_s9 = scalar_lea.vmem %s144_s7, 32 }
  0x2b   :  { %166 = vmatpush3.bf16.msra.mxu0 %v165_v5  ;;  %vm118_vm2 = vcmp.lt.s32.totalorder %v117_v8, 4  ;;  %p224_p2 = scmp.ne.s32.totalorder %s144_s7, %s223_s8  ;;  %p228_p3 = scmp.lt.s32.totalorder %s144_s7, %s144_s7 }
  0x2c   :  { %p229_p4 = scmp.lt.s32.totalorder %s227_s9, %s223_s8 }
  0x2e   :  { %162 = vmatmul.mubr.msk.f32.vlgmr.msra.gmra.mrb[0].mxu0 %vm42_vm1, %v39_v6  ;;  %p230_p5 = por %p229_p4, %p228_p3 }
  0x30   :  { %p231_p6 = pnand %p230_p5, %p224_p2 }
 0x101   :  { %v112_v9 = vpop.f32.mrb[0].mxu0 }
 0x102   :  { %v119_v10 = vsel %vm118_vm2, %v112_v9, -1e+30  ;;  %v163_v11 = vpop.f32.mrb[1].mxu0 }
 0x103   :  { %v121_v12 = vsel %vm120_vm3, %v119_v10, -inf }
 0x104   :  { %122 = vmax.xlane.f32.xlu0 %v121_v12 }
 0x191   :  { %v123_v13 = vpop.xlane.xlu0 %122 }
 0x192   :  { %v124_v14 = vsub.f32 %v119_v10, %v123_v13 }
 0x194   :  { %v125_v15 = vmul.f32 1.442695, %v124_v14 }
 0x196   :  { %175 = vpow2.f32 %v125_v15 }
 0x1a0   :  { %v176_v16 = vpop.eup %175 }
 0x1a1   :  { %v127_v17 = vsel %vm118_vm2, %v176_v16, 0.0 }
 0x1a2   :  { %v128_v18 = vsel %vm120_vm3, %v127_v17, 0.0 }
 0x1a3   :  { %129 = vadd.xlane.f32.xlu0 %v128_v18 }
 0x230   :  { %v130_v19 = vpop.xlane.xlu0 %129 }
 0x231   :  { %177 = vlog2.f32 %v130_v19 }
 0x23b   :  { %v178_v20 = vpop.eup %177 }
 0x23c   :  { %v132_v21 = vmul.f32 0.6931472, %v178_v20 }
 0x23e   :  { %v133_v22 = vadd.f32 %v132_v21, %v123_v13 }
 0x240   :  { %v134_v23 = vsub.f32 %v119_v10, %v133_v22 }
 0x242   :  { %v135_v24 = vsel %vm118_vm2, %v134_v23, 0.0 }
 0x243   :  { %136 = vst [vmem:[#allocation7] sm:$0x1] %v135_v24 }
 0x244   :  { %234 = shalt.err (!%p231_p6)
}
 0x245   :  { %s235_s12 = scalar_lea.hbm %s322_s2, 16 }
 0x246   :  { %p236_p7 = scmp.ne.s32.totalorder %s322_s2, %s235_s12  ;;  %p239_p8 = scmp.lt.u32.totalorder %s235_s12, %s322_s2 }
 0x248   :  { %p241_p9 = pnand %p239_p8, %p236_p7 }
 0x24a   :  { %244 = shalt.err (!%p241_p9)
}
 0x24b   :  { %146 = dma.vmem_to_hbm [thread:$0]  %s144_s7, 16, %s322_s2, [#allocation4]  }
 0x24c   :  { %249 = dma.done.wait [#allocation4], 16  }
 0x24d   :  { %250 = vsyncadd [#allocation4], 4294967280 }
 0x24e   :  { %150 = vsyncpa [#allocation3], 1 }
 0x24f   :  { %151 = vsyncpa [#allocation6], 1 }
 0x250   :  { %152 = vsyncpa [#allocation4], 1 }

</bundles_post_ra>
